<compile_context>
chip_gen: v6e
topology: v6e:2x2x1
jax: 0.10.0
libtpu: 0.0.40
codegen_flags: <defaults>
</compile_context>

<pallas_src>
import jax
import jax.numpy as jnp
from jax.experimental import pallas as pl
from jax.experimental.pallas import tpu as pltpu

EPS = 1e-5  # nn.BatchNorm2d default eps


def _affine_kernel(scale_ref, shift_ref, x_ref, o_ref):
    # scale/shift: (rows_blk, 1) f32, broadcast along the lane (HW) axis.
    # x: (rows_blk, hw_blk).  One FMA per element -- purely HBM-bound.
    o_ref[...] = (scale_ref[...] * x_ref[...] + shift_ref[...]).astype(o_ref.dtype)


def _round_up(x, m):
    return ((x + m - 1) // m) * m


def _device_kind():
    try:
        return jax.devices()[0].device_kind.lower()
    except Exception:
        return ""


def _plan(rows, hw, itemsize):
    """Pick (rows_blk, hw_blk, vmem_limit).  Blocks never require padding the
    arrays: the grid uses cdiv and Pallas masks partial boundary blocks."""
    is_v7 = "v7" in _device_kind()
    # sublane packing: 8 rows for 4-byte, 16 for 2-byte, 32 for 1-byte dtypes
    sub = 8 * max(1, 4 // max(1, itemsize))
    lane_cap = 4096 if is_v7 else 2048                 # lanes/tile (mult of 128)
    tile_bytes = (8 if is_v7 else 2) * 1024 * 1024     # per-tile byte budget
    vmem_limit = (48 if is_v7 else 32) * 1024 * 1024   # scoped VMEM override

    # Lane (HW) block: whole HW when it fits (block dim == full dim is legal
    # even if not a multiple of 128); otherwise a lane-dense 128-multiple tile
    # with a masked boundary block.
    hw_blk = hw if hw <= lane_cap else lane_cap

    lane_bytes = _round_up(hw_blk, 128) * itemsize
    rows_cap = max(sub, (tile_bytes // lane_bytes) // sub * sub)
    rows_blk = min(rows_cap, _round_up(rows, sub))

    # v7x has two TensorCores: if the grid would collapse to a single block,
    # split the row axis so both cores get work.
    if is_v7 and hw_blk >= hw and rows_blk >= rows and rows >= 2 * sub:
        rows_blk = _round_up(pl.cdiv(rows, 2), sub)

    return rows_blk, hw_blk, vmem_limit


def filmed_batchnorm2d(x, encoding, params, *, min_pallas_bytes=1 << 20):
    """x: (B, C, H, W) NCHW; encoding: (B, in_features)."""
    B, C, H, W = x.shape
    HW = H * W
    rows = B * C
    itemsize = x.dtype.itemsize

    # ---- FiLM MLPs, hoisted out of the kernel (full-width XLA matmuls) ------
    # weight_mlp: Linear(F->Hd, bias) -> ReLU -> Linear(Hd->C, no bias)
    h_w = jnp.maximum(encoding @ params["w1"] + params["b1"], 0.0)
    d_gamma = h_w @ params["w2"]                                   # (B, C)
    h_b = jnp.maximum(encoding @ params["v1"] + params["c1"], 0.0)
    d_beta = h_b @ params["v2"]                                    # (B, C)

    gamma = params["gamma0"] + d_gamma                             # (B, C)
    beta = params["beta0"] + d_beta                                # (B, C)
    # Fold BN stats into per-(b,c) scale/shift.  Divides by (var + eps),
    # matching the original PyTorch code (NOT sqrt(var + eps)).
    scale = (gamma / (params["running_var"] + EPS)).astype(jnp.float32)   # (B, C)
    shift = (beta - scale * params["running_mean"]).astype(jnp.float32)   # (B, C)

    # ---- small-input fast path ----------------------------------------------
    if rows * HW * itemsize < min_pallas_bytes:
        out = scale[:, :, None, None] * x + shift[:, :, None, None]
        return out.astype(x.dtype)

    # ---- Pallas path: cdiv grid, no padding, no output slice ----------------
    x2 = x.reshape(rows, HW)                 # contiguous view: free
    scale2 = scale.reshape(rows, 1)
    shift2 = shift.reshape(rows, 1)

    rows_blk, hw_blk, vmem_limit = _plan(rows, HW, itemsize)
    grid = (pl.cdiv(rows, rows_blk), pl.cdiv(HW, hw_blk))

    out = pl.pallas_call(
        _affine_kernel,
        out_shape=jax.ShapeDtypeStruct((rows, HW), x.dtype),
        grid_spec=pltpu.PrefetchScalarGridSpec(
            num_scalar_prefetch=0,
            grid=grid,
            in_specs=[
                pl.BlockSpec((rows_blk, 1), lambda i, j: (i, 0)),       # scale
                pl.BlockSpec((rows_blk, 1), lambda i, j: (i, 0)),       # shift
                pl.BlockSpec((rows_blk, hw_blk), lambda i, j: (i, j)),  # x
            ],
            out_specs=pl.BlockSpec((rows_blk, hw_blk), lambda i, j: (i, j)),
        ),
        compiler_params=pltpu.CompilerParams(
            dimension_semantics=("parallel", "parallel"),
            vmem_limit_bytes=vmem_limit,
        ),
        cost_estimate=pl.CostEstimate(
            flops=2 * rows * HW,
            transcendentals=0,
            bytes_accessed=2 * rows * HW * itemsize + 2 * rows * 4,
        ),
    )(scale2, shift2, x2)

    return out.reshape(B, C, H, W)


if __name__ == "__main__":
    key = jax.random.PRNGKey(0)
    B, C, H, W = 2, 4, 16, 16        # num_features = 4
    F, Hd = 32, 32                   # in_features, hidden_size
    ks = jax.random.split(key, 10)

    x = jax.random.normal(ks[0], (B, C, H, W), jnp.float32)
    enc = jax.random.normal(ks[1], (B, F), jnp.float32)

    # Deterministic synthetic parameters.  Linear weights stored as (in, out)
    # so y = x @ W (+ b), equivalent to torch's x @ W.T + b.
    params = dict(
        w1=jax.random.normal(ks[2], (F, Hd), jnp.float32) * 0.1,
        b1=jax.random.normal(ks[3], (1, Hd), jnp.float32) * 0.1,
        w2=jax.random.normal(ks[4], (Hd, C), jnp.float32) * 0.1,
        v1=jax.random.normal(ks[5], (F, Hd), jnp.float32) * 0.1,
        c1=jax.random.normal(ks[6], (1, Hd), jnp.float32) * 0.1,
        v2=jax.random.normal(ks[7], (Hd, C), jnp.float32) * 0.1,
        gamma0=jnp.ones((1, C), jnp.float32),                      # bn.weight.unsqueeze(0)
        beta0=jnp.zeros((1, C), jnp.float32),                      # bn.bias.unsqueeze(0)
        running_mean=jax.random.normal(ks[8], (1, C), jnp.float32) * 0.1,
        running_var=jnp.abs(jax.random.normal(ks[9], (1, C), jnp.float32)) + 0.5,
    )

    # Force the Pallas path (the demo tensor is tiny, so the default would take
    # the fast path) ...
    out = filmed_batchnorm2d(x, enc, params, min_pallas_bytes=0)
    jax.block_until_ready(out)
    # ... and also check the small-input fast path.
    out_fast = filmed_batchnorm2d(x, enc, params)
    jax.block_until_ready(out_fast)

    # plain-JAX reference (unfolded, matching the PyTorch forward exactly)
    h_w = jnp.maximum(enc @ params["w1"] + params["b1"], 0.0)
    d_gamma = h_w @ params["w2"]
    h_b = jnp.maximum(enc @ params["v1"] + params["c1"], 0.0)
    d_beta = h_b @ params["v2"]
    gamma = (params["gamma0"] + d_gamma)[:, :, None, None]
    beta = (params["beta0"] + d_beta)[:, :, None, None]
    mean = params["running_mean"].reshape(1, C, 1, 1)
    var = params["running_var"].reshape(1, C, 1, 1)
    ref = gamma * ((x - mean) / (var + EPS)) + beta

    assert out.shape == (B, C, H, W)
    assert jnp.allclose(out, ref, atol=1e-4, rtol=1e-4), "pallas path mismatch"
    assert jnp.allclose(out_fast, ref, atol=1e-4, rtol=1e-4), "fast path mismatch"
    print("KERNEL_OK")
</pallas_src>

<mosaic_0001>
module attributes {stable_mosaic.version = 11 : i64} {
  func.func @_affine_kernel(%arg0: i32, %arg1: i32, %arg2: memref<8x1xf32, #tpu.memory_space<vmem>>, %arg3: memref<8x1xf32, #tpu.memory_space<vmem>>, %arg4: memref<8x256xf32, #tpu.memory_space<vmem>>, %arg5: memref<8x256xf32, #tpu.memory_space<vmem>>) attributes {dimension_semantics = [#tpu.dimension_semantics<parallel>, #tpu.dimension_semantics<parallel>], iteration_bounds = array<i64: 1, 1>, scalar_prefetch = 0 : i64, scratch_operands = 0 : i64, tpu.core_type = #tpu.core_type<tc>, window_params = [{transform_indices = @transform_0, window_bounds = array<i64: 8, 1>}, {transform_indices = @transform_1, window_bounds = array<i64: 8, 1>}, {transform_indices = @transform_2, window_bounds = array<i64: 8, 256>}, {transform_indices = @transform_3, window_bounds = array<i64: 8, 256>}]} {
    %c0 = arith.constant 0 : index
    %c0_0 = arith.constant 0 : index
    %0 = vector.load %arg2[%c0, %c0_0] : memref<8x1xf32, #tpu.memory_space<vmem>>, vector<8x1xf32>
    %c0_1 = arith.constant 0 : index
    %c0_2 = arith.constant 0 : index
    %1 = vector.load %arg4[%c0_1, %c0_2] : memref<8x256xf32, #tpu.memory_space<vmem>>, vector<8x256xf32>
    %2 = vector.broadcast %0 : vector<8x1xf32> to vector<8x256xf32>
    %3 = arith.mulf %2, %1 : vector<8x256xf32>
    %c0_3 = arith.constant 0 : index
    %c0_4 = arith.constant 0 : index
    %4 = vector.load %arg3[%c0_3, %c0_4] : memref<8x1xf32, #tpu.memory_space<vmem>>, vector<8x1xf32>
    %5 = vector.broadcast %4 : vector<8x1xf32> to vector<8x256xf32>
    %6 = arith.addf %3, %5 : vector<8x256xf32>
    %c0_5 = arith.constant 0 : index
    %c0_6 = arith.constant 0 : index
    %7 = vector.load %arg5[%c0_5, %c0_6] : memref<8x256xf32, #tpu.memory_space<vmem>>, vector<8x256xf32>
    tpu.vector_store %arg5[%c0_5, %c0_6], %6 {strides = array<i32>} : memref<8x256xf32, #tpu.memory_space<vmem>>, vector<8x256xf32>,
    return
  }
  func.func @transform_0(%arg0: i32, %arg1: i32) -> (i32, i32) {
    %c0_i32 = arith.constant 0 : i32
    %c0_i32_0 = arith.constant 0 : i32
    return %arg0, %c0_i32 : i32, i32
  }
  func.func @transform_1(%arg0: i32, %arg1: i32) -> (i32, i32) {
    %c0_i32 = arith.constant 0 : i32
    %c0_i32_0 = arith.constant 0 : i32
    return %arg0, %c0_i32 : i32, i32
  }
  func.func @transform_2(%arg0: i32, %arg1: i32) -> (i32, i32) {
    %c0_i32 = arith.constant 0 : i32
    return %arg0, %arg1 : i32, i32
  }
  func.func @transform_3(%arg0: i32, %arg1: i32) -> (i32, i32) {
    %c0_i32 = arith.constant 0 : i32
    return %arg0, %arg1 : i32, i32
  }
}

</mosaic_0001>

<bundles_post_ra>
// kernel: tpu_custom_call.1
= control target key start
LH: loop header
LB: loop body
LE: loop exit
PB: predicated region body
PF: predicated region fallthrough
CT: control target
= control target key end

     0   :  { %v74_v1 = vmov 0   ;;  %s111_s0 = inlined_call_operand.vmem [shape: f32[8,1], index: 0, kind: input, shape index: {}]   ;;  %s112_s1 = inlined_call_operand.vmem [shape: f32[8,1], index: 1, kind: input, shape index: {}]   ;;  %s113_s2 = inlined_call_operand.vmem [shape: f32[8,256], index: 2, kind: input, shape index: {}]   ;;  %s114_s3 = inlined_call_operand.hbm [shape: f32[8,256], index: 3, kind: output, shape index: {}]  }
   0x1   :  { %v15_v0 = vld [vmem:[%s111_s0] sm:$0xff]  ;;  %51 = vset.pattern.permute.xlu0 %v74_v1 }
   0x2   :  { %8 = vsyncpa [#allocation3], 0  ;;  %20 = vperm.xlu0 %51, %v15_v0   ;;  %v25_v2 = vld [vmem:[%s112_s1] sm:$0xff]  ;;  %v17_v4 = vld [vmem:[%s113_s2 + $0x8] sm:$0xff]  ;;  %s75_s20 = smov [#allocation2]  }
   0x3   :  { %v16_v3 = vld [vmem:[%s113_s2] sm:$0xff]  ;;  %s41_s0 = sshll.u32 %s75_s20, 4  ;;  %s42_s0 = int_to_ptr.vmem [resolvable:$true] %s41_s0 }
   0x4   :  { %s52_s1 = scalar_lea.vmem %s42_s0, 256  ;;  %p57_p1 = scmp.lt.s32.totalorder %s42_s0, %s42_s0 }
   0x5   :  { %p53_p0 = scmp.ne.s32.totalorder %s42_s0, %s52_s1  ;;  %p58_p2 = scmp.lt.s32.totalorder %s52_s1, %s52_s1 }
   0x6   :  { %28 = vperm.xlu0 %51, %v25_v2  }
   0x7   :  { %p59_p3 = por %p58_p2, %p57_p1 }
   0x9   :  { %p60_p4 = pnand %p59_p3, %p53_p0 }
  0x7d   :  { %v21_v5 = vpop.permute.xlu0 %20 }
  0x7e   :  { %v23_v6 = vmul.f32 %v21_v5, %v16_v3  ;;  %v24_v7 = vmul.f32 %v21_v5, %v17_v4 }
  0x81   :  { %v29_v8 = vpop.permute.xlu0 %28 }
  0x82   :  { %v31_v9 = vadd.f32 %v29_v8, %v23_v6  ;;  %v32_v10 = vadd.f32 %v29_v8, %v24_v7 }
  0x84   :  { %33 = vst [vmem:[#allocation2] sm:$0xff] %v31_v9  ;;  %34 = vst [vmem:[#allocation2 + $0x8] sm:$0xff] %v32_v10 }
  0x85   :  { %63 = shalt.err (!%p60_p4)
}
  0x86   :  { %44 = dma.vmem_to_hbm [thread:$0]  %s42_s0, 256, %s114_s3, [#allocation3]  }
  0x87   :  { %72 = dma.done.wait [#allocation3], 256  }
  0x88   :  { %73 = vsyncadd [#allocation3], 4294967040 }
  0x89   :  { %48 = vsyncpa [#allocation3], 1 }

</bundles_post_ra>
